<compile_context>
chip_gen: v7x
topology: tpu7x:2x2x1
jax: 0.10.0
libtpu: 0.0.40
codegen_flags: <defaults>
</compile_context>

<pallas_src>
import functools

import jax
import jax.numpy as jnp
from jax.experimental import pallas as pl
from jax.experimental.pallas import tpu as pltpu

LANE = 128  # lane width used to pad the fused block's internal channel dims


# ----------------------------------------------------------------------------
# Per-generation tiling / VMEM budget (lazy, conservative fallback)
# ----------------------------------------------------------------------------
@functools.lru_cache(maxsize=None)
def _vmem_budget():
    """Returns (tm_cap, vmem_limit_bytes) for the current device."""
    try:
        cap = int(pltpu.get_tpu_info().vmem_capacity_bytes)
    except Exception:
        cap = 64 << 20  # assume the smallest per-TC VMEM (v7x) when unknown
    # Never request more than ~half of physical VMEM and cap at 48 MiB so
    # double-buffering / compiler scratch keep headroom on every generation.
    limit = int(min(cap // 2, 48 << 20))
    # Per-tile footprint at 128 lanes is ~TM * 2 KiB; 4096 rows fits everywhere.
    tm_cap = 4096 if cap >= (100 << 20) else 2048
    return tm_cap, limit


def _pick_tm(m):
    """Row tile: multiple of 8, as large as the cap allows; split in two only
    when per-tile work is non-trivial (so v7x's 2nd TensorCore gets a block)."""
    tm_cap, _ = _vmem_budget()
    if m <= 8:
        return m                      # full-dim block
    if m > tm_cap:
        return tm_cap
    if m >= 2048:
        return min(tm_cap, ((m + 1) // 2 + 7) // 8 * 8)
    return m if m % 8 == 0 else (m // 8) * 8


# ----------------------------------------------------------------------------
# Wrapper-side im2col (taps concatenated along channels -> single MXU dot)
# ----------------------------------------------------------------------------
def _im2col(x_nhwc, ksize, stride, padding):
    """NHWC -> (N*Ho*Wo, ksize*ksize*C) patches, plus output spatial shape."""
    N, H, W, C = x_nhwc.shape
    Ho = (H + 2 * padding - ksize) // stride + 1
    Wo = (W + 2 * padding - ksize) // stride + 1
    xp = jnp.pad(x_nhwc, ((0, 0), (padding, padding), (padding, padding), (0, 0)))
    cols = []
    for kh in range(ksize):
        for kw in range(ksize):
            sl = jax.lax.slice(
                xp,
                (0, kh, kw, 0),
                (N, kh + (Ho - 1) * stride + 1, kw + (Wo - 1) * stride + 1, C),
                (1, stride, stride, 1))
            cols.append(sl.reshape(N * Ho * Wo, C))
    # TODO(synk): in-kernel halo extraction (memory_space=pl.ANY + make_async_copy)
    #             would remove this residual im2col glue traffic entirely.
    return jnp.concatenate(cols, axis=-1), (N, Ho, Wo)


# ----------------------------------------------------------------------------
# Kernel 1: conv (as im2col matmul) + bias + LeakyReLU   grid = (M_tiles,)
# ----------------------------------------------------------------------------
def _matmul_bias_act_kernel(a_ref, w_ref, b_ref, o_ref, *, negative_slope):
    y = jnp.dot(a_ref[...], w_ref[...], preferred_element_type=jnp.float32)
    y = y + b_ref[...]
    if negative_slope is not None:
        y = jnp.where(y >= 0.0, y, y * negative_slope)
    o_ref[...] = y.astype(o_ref.dtype)


def matmul_bias_act(a, w, b, *, negative_slope, out_dtype):
    """a: (M, K) bf16; w: (K, Cout) bf16; b: (1, Cout) f32 -> (M, Cout) out_dtype."""
    M, K = a.shape
    Cout = w.shape[1]
    TM = _pick_tm(M)
    _, vmem_limit = _vmem_budget()
    grid = (pl.cdiv(M, TM),)
    kernel = functools.partial(_matmul_bias_act_kernel,
                               negative_slope=negative_slope)

    flops = 2 * M * K * Cout
    bytes_accessed = (a.size * a.dtype.itemsize + w.size * w.dtype.itemsize
                      + b.size * 4 + M * Cout * jnp.dtype(out_dtype).itemsize)

    return pl.pallas_call(
        kernel,
        grid=grid,
        out_shape=jax.ShapeDtypeStruct((M, Cout), out_dtype),
        in_specs=[
            pl.BlockSpec((TM, K), lambda i: (i, 0)),
            pl.BlockSpec((K, Cout), lambda i: (0, 0)),
            pl.BlockSpec((1, Cout), lambda i: (0, 0)),
        ],
        out_specs=pl.BlockSpec((TM, Cout), lambda i: (i, 0)),
        compiler_params=pltpu.CompilerParams(
            dimension_semantics=("parallel",),
            vmem_limit_bytes=vmem_limit),
        cost_estimate=pl.CostEstimate(flops=flops, transcendentals=0,
                                      bytes_accessed=bytes_accessed),
    )(a, w, b)


# ----------------------------------------------------------------------------
# Kernel 2: fused conv2 (im2col matmul) + neck 1x1 + head 1x1   grid = (M_tiles,)
#   Intermediates stay in VMEM/vregs; only the final prediction hits HBM.
# ----------------------------------------------------------------------------
def _conv2_neck_head_kernel(a_ref, w2_ref, b2_ref, w3_ref, b3_ref,
                            w4_ref, b4_ref, o_ref, *, negative_slope):
    # conv2 + LeakyReLU
    h = jnp.dot(a_ref[...], w2_ref[...], preferred_element_type=jnp.float32)
    h = h + b2_ref[...]
    h = jnp.where(h >= 0.0, h, h * negative_slope)
    # neck 1x1 + LeakyReLU
    h = jnp.dot(h.astype(jnp.bfloat16), w3_ref[...],
                preferred_element_type=jnp.float32)
    h = h + b3_ref[...]
    h = jnp.where(h >= 0.0, h, h * negative_slope)
    # head 1x1 (linear)
    y = jnp.dot(h.astype(jnp.bfloat16), w4_ref[...],
                preferred_element_type=jnp.float32)
    y = y + b4_ref[...]
    o_ref[...] = y.astype(o_ref.dtype)


def conv2_neck_head_fused(a, w2, b2, w3, b3, w4, b4, *, negative_slope):
    """a: (M, K) bf16; weights bf16 (Couts padded to 128 lanes); biases (1, C) f32."""
    M, K = a.shape
    C2, C3, C4 = w2.shape[1], w3.shape[1], w4.shape[1]
    TM = _pick_tm(M)
    _, vmem_limit = _vmem_budget()
    grid = (pl.cdiv(M, TM),)
    kernel = functools.partial(_conv2_neck_head_kernel,
                               negative_slope=negative_slope)

    flops = 2 * M * (K * C2 + C2 * C3 + C3 * C4)
    bytes_accessed = (a.size * 2 + w2.size * 2 + w3.size * 2 + w4.size * 2
                      + (b2.size + b3.size + b4.size) * 4 + M * C4 * 4)

    return pl.pallas_call(
        kernel,
        grid=grid,
        out_shape=jax.ShapeDtypeStruct((M, C4), jnp.float32),
        in_specs=[
            pl.BlockSpec((TM, K), lambda i: (i, 0)),
            pl.BlockSpec((K, C2), lambda i: (0, 0)),
            pl.BlockSpec((1, C2), lambda i: (0, 0)),
            pl.BlockSpec((C2, C3), lambda i: (0, 0)),
            pl.BlockSpec((1, C3), lambda i: (0, 0)),
            pl.BlockSpec((C3, C4), lambda i: (0, 0)),
            pl.BlockSpec((1, C4), lambda i: (0, 0)),
        ],
        out_specs=pl.BlockSpec((TM, C4), lambda i: (i, 0)),
        compiler_params=pltpu.CompilerParams(
            dimension_semantics=("parallel",),
            vmem_limit_bytes=vmem_limit),
        cost_estimate=pl.CostEstimate(flops=flops, transcendentals=0,
                                      bytes_accessed=bytes_accessed),
    )(a, w2, b2, w3, b3, w4, b4)


# ----------------------------------------------------------------------------
# Parameter packing helpers
# ----------------------------------------------------------------------------
def _pack_conv_w(w, cout_pad=None):
    """(KH, KW, Cin, Cout) f32 -> (KH*KW*Cin, Cout[_pad]) bf16 (im2col tap order)."""
    KH, KW, Cin, Cout = w.shape
    w2d = w.reshape(KH * KW * Cin, Cout)
    if cout_pad is not None and cout_pad > Cout:
        w2d = jnp.pad(w2d, ((0, 0), (0, cout_pad - Cout)))
    return w2d.astype(jnp.bfloat16)


def _pack_mat(w2d, cin_pad=None, cout_pad=None):
    Cin, Cout = w2d.shape
    pr = (cin_pad - Cin) if (cin_pad and cin_pad > Cin) else 0
    pc = (cout_pad - Cout) if (cout_pad and cout_pad > Cout) else 0
    return jnp.pad(w2d, ((0, pr), (0, pc))).astype(jnp.bfloat16)


def _pack_bias(b, pad=None):
    if pad is not None and pad > b.shape[0]:
        b = jnp.pad(b, (0, pad - b.shape[0]))
    return b.reshape(1, -1).astype(jnp.float32)


# ----------------------------------------------------------------------------
# YOLOv1 model (synthetic deterministic parameters)
# ----------------------------------------------------------------------------
class YOLOv1Pallas:
    def __init__(self, in_channels=4, num_classes=4, num_boxes=2, seed=0):
        self.num_classes = num_classes
        self.num_boxes = num_boxes
        self.head_ch = num_boxes * 5 + num_classes
        assert self.head_ch <= LANE

        key = jax.random.PRNGKey(seed)
        ks = jax.random.split(key, 4)

        def init_conv(k, kh, kw, cin, cout):
            # mirrors initialize_weights(): normal(0, 0.01) weights, zero bias
            w = 0.01 * jax.random.normal(k, (kh, kw, cin, cout), jnp.float32)
            b = jnp.zeros((cout,), jnp.float32)
            return w, b

        w1, b1 = init_conv(ks[0], 3, 3, in_channels, 16)      # backbone conv1
        w2, b2 = init_conv(ks[1], 3, 3, 16, 32)               # backbone conv2
        w3, b3 = init_conv(ks[2], 1, 1, 32, 32)               # neck
        w4, b4 = init_conv(ks[3], 1, 1, 32, self.head_ch)     # head

        # conv1 stores only its real 16 channels (narrow K for conv2's im2col is
        # cheaper than carrying a 128-wide padded K through HBM).
        self.w1 = _pack_conv_w(w1)                    # (9*Cin, 16) bf16
        self.b1 = _pack_bias(b1)                      # (1, 16)    f32
        # conv2 / neck / head are fused; their intermediates never leave VMEM, so
        # pad those Couts to 128 lanes (padded channels stay exactly 0: zero
        # weights/bias and LeakyReLU(0)=0).
        self.w2 = _pack_conv_w(w2, cout_pad=LANE)     # (144, 128) bf16
        self.b2 = _pack_bias(b2, pad=LANE)
        self.w3 = _pack_mat(w3[0, 0], cin_pad=LANE, cout_pad=LANE)
        self.b3 = _pack_bias(b3, pad=LANE)
        self.w4 = _pack_mat(w4[0, 0], cin_pad=LANE, cout_pad=LANE)
        self.b4 = _pack_bias(b4, pad=LANE)

        self.forward = jax.jit(self._forward)

    def _forward(self, x_nchw):
        # PyTorch NCHW input -> NHWC (channels on lanes), bf16 for the MXU;
        # accumulation / bias / LeakyReLU stay f32 inside the kernels.
        x = jnp.transpose(x_nchw, (0, 2, 3, 1)).astype(jnp.bfloat16)

        # backbone conv1: 3x3/s2 + LeakyReLU(0.1), one MXU dot per row tile,
        # bf16 activations emitted directly by the kernel.
        a1, (N, H1, W1) = _im2col(x, 3, 2, 1)
        y1 = matmul_bias_act(a1, self.w1, self.b1,
                             negative_slope=0.1, out_dtype=jnp.bfloat16)

        # backbone conv2 + neck + head fused into one pallas_call.
        a2, (_, H2, W2) = _im2col(y1.reshape(N, H1, W1, -1), 3, 2, 1)
        y = conv2_neck_head_fused(a2, self.w2, self.b2, self.w3, self.b3,
                                  self.w4, self.b4, negative_slope=0.1)

        # YOLOv1 grid prediction: (N, S, S, B*5 + C); drop lane padding.
        # TODO(synk): the registry head's exact post-activation (sigmoid /
        #             box-vs-class split) is config-dependent; head stays linear.
        return y[:, : self.head_ch].reshape(N, H2, W2, self.head_ch)


if __name__ == "__main__":
    key = jax.random.PRNGKey(0)
    x = jax.random.normal(key, (2, 4, 16, 16), dtype=jnp.float32)  # NCHW

    model = YOLOv1Pallas(in_channels=4, num_classes=4, num_boxes=2, seed=0)
    out = jax.block_until_ready(model.forward(x))

    assert out.shape == (2, 4, 4, model.num_boxes * 5 + model.num_classes), out.shape
    assert bool(jnp.all(jnp.isfinite(out)))
    print("KERNEL_OK")
</pallas_src>

<mosaic_0001>
module attributes {stable_mosaic.version = 11 : i64} {
  func.func @_matmul_bias_act_kernel(%arg0: i32, %arg1: memref<128x36xbf16, #tpu.memory_space<vmem>>, %arg2: memref<36x16xbf16, #tpu.memory_space<vmem>>, %arg3: memref<1x16xf32, #tpu.memory_space<vmem>>, %arg4: memref<128x16xbf16, #tpu.memory_space<vmem>>) attributes {dimension_semantics = [#tpu.dimension_semantics<parallel>], iteration_bounds = array<i64: 1>, scalar_prefetch = 0 : i64, scratch_operands = 0 : i64, tpu.core_type = #tpu.core_type<tc>, window_params = [{transform_indices = @transform_0, window_bounds = array<i64: 128, 36>}, {pipeline_mode = #tpu.pipeline_mode<synchronous>, transform_indices = @transform_1, window_bounds = array<i64: 36, 16>}, {pipeline_mode = #tpu.pipeline_mode<synchronous>, transform_indices = @transform_2, window_bounds = array<i64: 1, 16>}, {transform_indices = @transform_3, window_bounds = array<i64: 128, 16>}]} {
    %c0 = arith.constant 0 : index
    %c0_0 = arith.constant 0 : index
    %0 = vector.load %arg1[%c0, %c0_0] : memref<128x36xbf16, #tpu.memory_space<vmem>>, vector<128x36xbf16>
    %c0_1 = arith.constant 0 : index
    %c0_2 = arith.constant 0 : index
    %1 = vector.load %arg2[%c0_1, %c0_2] : memref<36x16xbf16, #tpu.memory_space<vmem>>, vector<36x16xbf16>
    %cst = arith.constant dense<0.000000e+00> : vector<128x16xf32>
    %2 = tpu.matmul %0, %1, %cst {dimension_numbers = #tpu.dot_dimension_numbers<[1], [0], [0], [1], [0, 0, 1, 1], [], []>} : vector<128x36xbf16>, vector<36x16xbf16>, vector<128x16xf32> -> vector<128x16xf32>
    %c0_3 = arith.constant 0 : index
    %c0_4 = arith.constant 0 : index
    %3 = vector.load %arg3[%c0_3, %c0_4] : memref<1x16xf32, #tpu.memory_space<vmem>>, vector<1x16xf32>
    %4 = vector.broadcast %3 : vector<1x16xf32> to vector<128x16xf32>
    %5 = arith.addf %2, %4 : vector<128x16xf32>
    %cst_5 = arith.constant 0.000000e+00 : f32
    %6 = vector.broadcast %cst_5 : f32 to vector<128x16xf32>
    %7 = arith.cmpf oge, %5, %6 : vector<128x16xf32>
    %cst_6 = arith.constant 1.000000e-01 : f32
    %8 = vector.broadcast %cst_6 : f32 to vector<128x16xf32>
    %9 = arith.mulf %5, %8 : vector<128x16xf32>
    %10 = arith.select %7, %5, %9 : vector<128x16xi1>, vector<128x16xf32>
    %11 = arith.truncf %10 : vector<128x16xf32> to vector<128x16xbf16>
    %c0_7 = arith.constant 0 : index
    %c0_8 = arith.constant 0 : index
    %12 = vector.load %arg4[%c0_7, %c0_8] : memref<128x16xbf16, #tpu.memory_space<vmem>>, vector<128x16xbf16>
    tpu.vector_store %arg4[%c0_7, %c0_8], %11 {strides = array<i32>} : memref<128x16xbf16, #tpu.memory_space<vmem>>, vector<128x16xbf16>,
    return
  }
  func.func @transform_0(%arg0: i32) -> (i32, i32) {
    %c0_i32 = arith.constant 0 : i32
    %c0_i32_0 = arith.constant 0 : i32
    return %arg0, %c0_i32 : i32, i32
  }
  func.func @transform_1(%arg0: i32) -> (i32, i32) {
    %c0_i32 = arith.constant 0 : i32
    %c0_i32_0 = arith.constant 0 : i32
    %c0_i32_1 = arith.constant 0 : i32
    return %c0_i32, %c0_i32_0 : i32, i32
  }
  func.func @transform_2(%arg0: i32) -> (i32, i32) {
    %c0_i32 = arith.constant 0 : i32
    %c0_i32_0 = arith.constant 0 : i32
    %c0_i32_1 = arith.constant 0 : i32
    return %c0_i32, %c0_i32_0 : i32, i32
  }
  func.func @transform_3(%arg0: i32) -> (i32, i32) {
    %c0_i32 = arith.constant 0 : i32
    %c0_i32_0 = arith.constant 0 : i32
    return %arg0, %c0_i32 : i32, i32
  }
}

module attributes {stable_mosaic.version = 11 : i64} {
  func.func @_conv2_neck_head_kernel(%arg0: i32, %arg1: memref<32x144xbf16, #tpu.memory_space<vmem>>, %arg2: memref<144x128xbf16, #tpu.memory_space<vmem>>, %arg3: memref<1x128xf32, #tpu.memory_space<vmem>>, %arg4: memref<128x128xbf16, #tpu.memory_space<vmem>>, %arg5: memref<1x128xf32, #tpu.memory_space<vmem>>, %arg6: memref<128x128xbf16, #tpu.memory_space<vmem>>, %arg7: memref<1x128xf32, #tpu.memory_space<vmem>>, %arg8: memref<32x128xf32, #tpu.memory_space<vmem>>) attributes {dimension_semantics = [#tpu.dimension_semantics<parallel>], iteration_bounds = array<i64: 1>, scalar_prefetch = 0 : i64, scratch_operands = 0 : i64, tpu.core_type = #tpu.core_type<tc>, window_params = [{transform_indices = @transform_0, window_bounds = array<i64: 32, 144>}, {pipeline_mode = #tpu.pipeline_mode<synchronous>, transform_indices = @transform_1, window_bounds = array<i64: 144, 128>}, {pipeline_mode = #tpu.pipeline_mode<synchronous>, transform_indices = @transform_2, window_bounds = array<i64: 1, 128>}, {pipeline_mode = #tpu.pipeline_mode<synchronous>, transform_indices = @transform_3, window_bounds = array<i64: 128, 128>}, {pipeline_mode = #tpu.pipeline_mode<synchronous>, transform_indices = @transform_4, window_bounds = array<i64: 1, 128>}, {pipeline_mode = #tpu.pipeline_mode<synchronous>, transform_indices = @transform_5, window_bounds = array<i64: 128, 128>}, {pipeline_mode = #tpu.pipeline_mode<synchronous>, transform_indices = @transform_6, window_bounds = array<i64: 1, 128>}, {transform_indices = @transform_7, window_bounds = array<i64: 32, 128>}]} {
    %c0 = arith.constant 0 : index
    %c0_0 = arith.constant 0 : index
    %0 = vector.load %arg1[%c0, %c0_0] : memref<32x144xbf16, #tpu.memory_space<vmem>>, vector<32x144xbf16>
    %c0_1 = arith.constant 0 : index
    %c0_2 = arith.constant 0 : index
    %1 = vector.load %arg2[%c0_1, %c0_2] : memref<144x128xbf16, #tpu.memory_space<vmem>>, vector<144x128xbf16>
    %cst = arith.constant dense<0.000000e+00> : vector<32x128xf32>
    %2 = tpu.matmul %0, %1, %cst {dimension_numbers = #tpu.dot_dimension_numbers<[1], [0], [0], [1], [0, 0, 1, 1], [], []>} : vector<32x144xbf16>, vector<144x128xbf16>, vector<32x128xf32> -> vector<32x128xf32>
    %c0_3 = arith.constant 0 : index
    %c0_4 = arith.constant 0 : index
    %3 = vector.load %arg3[%c0_3, %c0_4] : memref<1x128xf32, #tpu.memory_space<vmem>>, vector<1x128xf32>
    %4 = vector.broadcast %3 : vector<1x128xf32> to vector<32x128xf32>
    %5 = arith.addf %2, %4 : vector<32x128xf32>
    %cst_5 = arith.constant 0.000000e+00 : f32
    %6 = vector.broadcast %cst_5 : f32 to vector<32x128xf32>
    %7 = arith.cmpf oge, %5, %6 : vector<32x128xf32>
    %cst_6 = arith.constant 1.000000e-01 : f32
    %8 = vector.broadcast %cst_6 : f32 to vector<32x128xf32>
    %9 = arith.mulf %5, %8 : vector<32x128xf32>
    %10 = arith.select %7, %5, %9 : vector<32x128xi1>, vector<32x128xf32>
    %11 = arith.truncf %10 : vector<32x128xf32> to vector<32x128xbf16>
    %c0_7 = arith.constant 0 : index
    %c0_8 = arith.constant 0 : index
    %12 = vector.load %arg4[%c0_7, %c0_8] : memref<128x128xbf16, #tpu.memory_space<vmem>>, vector<128x128xbf16>
    %cst_9 = arith.constant dense<0.000000e+00> : vector<32x128xf32>
    %13 = tpu.matmul %11, %12, %cst_9 {dimension_numbers = #tpu.dot_dimension_numbers<[1], [0], [0], [1], [0, 0, 1, 1], [], []>} : vector<32x128xbf16>, vector<128x128xbf16>, vector<32x128xf32> -> vector<32x128xf32>
    %c0_10 = arith.constant 0 : index
    %c0_11 = arith.constant 0 : index
    %14 = vector.load %arg5[%c0_10, %c0_11] : memref<1x128xf32, #tpu.memory_space<vmem>>, vector<1x128xf32>
    %15 = vector.broadcast %14 : vector<1x128xf32> to vector<32x128xf32>
    %16 = arith.addf %13, %15 : vector<32x128xf32>
    %cst_12 = arith.constant 0.000000e+00 : f32
    %17 = vector.broadcast %cst_12 : f32 to vector<32x128xf32>
    %18 = arith.cmpf oge, %16, %17 : vector<32x128xf32>
    %cst_13 = arith.constant 1.000000e-01 : f32
    %19 = vector.broadcast %cst_13 : f32 to vector<32x128xf32>
    %20 = arith.mulf %16, %19 : vector<32x128xf32>
    %21 = arith.select %18, %16, %20 : vector<32x128xi1>, vector<32x128xf32>
    %22 = arith.truncf %21 : vector<32x128xf32> to vector<32x128xbf16>
    %c0_14 = arith.constant 0 : index
    %c0_15 = arith.constant 0 : index
    %23 = vector.load %arg6[%c0_14, %c0_15] : memref<128x128xbf16, #tpu.memory_space<vmem>>, vector<128x128xbf16>
    %cst_16 = arith.constant dense<0.000000e+00> : vector<32x128xf32>
    %24 = tpu.matmul %22, %23, %cst_16 {dimension_numbers = #tpu.dot_dimension_numbers<[1], [0], [0], [1], [0, 0, 1, 1], [], []>} : vector<32x128xbf16>, vector<128x128xbf16>, vector<32x128xf32> -> vector<32x128xf32>
    %c0_17 = arith.constant 0 : index
    %c0_18 = arith.constant 0 : index
    %25 = vector.load %arg7[%c0_17, %c0_18] : memref<1x128xf32, #tpu.memory_space<vmem>>, vector<1x128xf32>
    %26 = vector.broadcast %25 : vector<1x128xf32> to vector<32x128xf32>
    %27 = arith.addf %24, %26 : vector<32x128xf32>
    %c0_19 = arith.constant 0 : index
    %c0_20 = arith.constant 0 : index
    %28 = vector.load %arg8[%c0_19, %c0_20] : memref<32x128xf32, #tpu.memory_space<vmem>>, vector<32x128xf32>
    tpu.vector_store %arg8[%c0_19, %c0_20], %27 {strides = array<i32>} : memref<32x128xf32, #tpu.memory_space<vmem>>, vector<32x128xf32>,
    return
  }
  func.func @transform_0(%arg0: i32) -> (i32, i32) {
    %c0_i32 = arith.constant 0 : i32
    %c0_i32_0 = arith.constant 0 : i32
    return %arg0, %c0_i32 : i32, i32
  }
  func.func @transform_1(%arg0: i32) -> (i32, i32) {
    %c0_i32 = arith.constant 0 : i32
    %c0_i32_0 = arith.constant 0 : i32
    %c0_i32_1 = arith.constant 0 : i32
    return %c0_i32, %c0_i32_0 : i32, i32
  }
  func.func @transform_2(%arg0: i32) -> (i32, i32) {
    %c0_i32 = arith.constant 0 : i32
    %c0_i32_0 = arith.constant 0 : i32
    %c0_i32_1 = arith.constant 0 : i32
    return %c0_i32, %c0_i32_0 : i32, i32
  }
  func.func @transform_3(%arg0: i32) -> (i32, i32) {
    %c0_i32 = arith.constant 0 : i32
    %c0_i32_0 = arith.constant 0 : i32
    %c0_i32_1 = arith.constant 0 : i32
    return %c0_i32, %c0_i32_0 : i32, i32
  }
  func.func @transform_4(%arg0: i32) -> (i32, i32) {
    %c0_i32 = arith.constant 0 : i32
    %c0_i32_0 = arith.constant 0 : i32
    %c0_i32_1 = arith.constant 0 : i32
    return %c0_i32, %c0_i32_0 : i32, i32
  }
  func.func @transform_5(%arg0: i32) -> (i32, i32) {
    %c0_i32 = arith.constant 0 : i32
    %c0_i32_0 = arith.constant 0 : i32
    %c0_i32_1 = arith.constant 0 : i32
    return %c0_i32, %c0_i32_0 : i32, i32
  }
  func.func @transform_6(%arg0: i32) -> (i32, i32) {
    %c0_i32 = arith.constant 0 : i32
    %c0_i32_0 = arith.constant 0 : i32
    %c0_i32_1 = arith.constant 0 : i32
    return %c0_i32, %c0_i32_0 : i32, i32
  }
  func.func @transform_7(%arg0: i32) -> (i32, i32) {
    %c0_i32 = arith.constant 0 : i32
    %c0_i32_0 = arith.constant 0 : i32
    return %arg0, %c0_i32 : i32, i32
  }
}

</mosaic_0001>

<bundles_post_ra>
// kernel: _forward.3
= control target key start
LH: loop header
LB: loop body
LE: loop exit
PB: predicated region body
PF: predicated region fallthrough
CT: control target
= control target key end

     0   :  { %v626_v1 = vmov 0   ;;  %vm129_vm0 = vcmask 130048   ;;  %s780_s0 = inlined_call_operand.vmem [shape: bf16[32,144], index: 0, kind: input, shape index: {}]   ;;  %s781_s1 = inlined_call_operand.vmem [shape: bf16[144,128], index: 1, kind: input, shape index: {}]   ;;  %s782_s2 = inlined_call_operand.vmem [shape: f32[1,128], index: 2, kind: input, shape index: {}, may-alias: {2,4,6}]   ;;  %s783_s3 = inlined_call_operand.vmem [shape: bf16[128,128], index: 3, kind: input, shape index: {}]   ;;  %s784_s4 = inlined_call_operand.vmem [shape: f32[1,128], index: 4, kind: input, shape index: {}, may-alias: {2,4,6}]   ;;  %s785_s5 = inlined_call_operand.vmem [shape: bf16[128,128], index: 5, kind: input, shape index: {}]   ;;  %s786_s6 = inlined_call_operand.vmem [shape: f32[1,128], index: 6, kind: input, shape index: {}, may-alias: {2,4,6}]   ;;  %s787_s7 = inlined_call_operand.hbm [shape: f32[32,128], index: 7, kind: output, shape index: {}]  }
   0x1   :  { %v571_v0 = vld [vmem:[%s781_s1] sm:$0xff]   ;;  %136 = vmatprep.subr.bf16.mxu0 %v626_v1  ;;  %v572_v2 = vld [vmem:[%s781_s1 + $0x8] sm:$0xff]   ;;  %v573_v3 = vld [vmem:[%s781_s1 + $0x10] sm:$0xff]  }
   0x2   :  { %137 = vmatpush1.bf16.msra.mxu0 %v571_v0  ;;  %v574_v4 = vld [vmem:[%s781_s1 + $0x18] sm:$0xff]   ;;  %v582_v5 = vld [vmem:[%s780_s0 + $0x4] ss:$8 sps:$4 sm:$0xff]   ;;  %v588_v9 = vld [vmem:[%s783_s3 + $0x10] sm:$0xff]  }
   0x3   :  { %138 = vmatprep.subr.bf16.mxu0 %v626_v1  ;;  %487 = vmatprep.mubr.msk.bf16.mxu0 %vm129_vm0, %v582_v5  ;;  %v586_v6 = vld [vmem:[%s783_s3] sm:$0xff]   ;;  %v587_v7 = vld [vmem:[%s783_s3 + $0x8] sm:$0xff]   ;;  %v589_v11 = vld [vmem:[%s783_s3 + $0x18] sm:$0xff]  }
   0x4   :  { %v575_v8 = vld [vmem:[%s781_s1 + $0x20] sm:$0xff]   ;;  %527 = vmatprep.subr.bf16.mxu1 %v586_v6  ;;  %v576_v10 = vld [vmem:[%s781_s1 + $0x28] sm:$0xff]   ;;  %v577_v12 = vld [vmem:[%s781_s1 + $0x30] sm:$0xff]  }
   0x5   :  { %528 = vmatpush3.bf16.msra.mxu1 %v586_v6 }
   0x6   :  { %139 = vmatpush1.bf16.msra.mxu0 %v572_v2  ;;  %529 = vmatprep.subr.bf16.mxu1 %v587_v7 }
   0x7   :  { %140 = vmatprep.subr.bf16.mxu0 %v626_v1 }
   0x9   :  { %530 = vmatpush3.bf16.msra.mxu1 %v587_v7 }
   0xa   :  { %141 = vmatpush1.bf16.msra.mxu0 %v573_v3  ;;  %531 = vmatprep.subr.bf16.mxu1 %v588_v9 }
   0xb   :  { %142 = vmatprep.subr.bf16.mxu0 %v626_v1 }
   0xd   :  { %532 = vmatpush3.bf16.msra.mxu1 %v588_v9 }
   0xe   :  { %143 = vmatpush1.bf16.msra.mxu0 %v574_v4  ;;  %533 = vmatprep.subr.bf16.mxu1 %v589_v11 }
   0xf   :  { %144 = vmatprep.subr.bf16.mxu0 %v626_v1 }
  0x12   :  { %145 = vmatpush1.bf16.msra.mxu0 %v575_v8 }
  0x13   :  { %146 = vmatprep.subr.bf16.mxu0 %v626_v1 }
  0x16   :  { %147 = vmatpush1.bf16.msra.mxu0 %v576_v10 }
  0x17   :  { %148 = vmatprep.subr.bf16.mxu0 %v626_v1 }
  0x18   :  { %12 = vsyncpa [#allocation3], 0  ;;  %v578_v13 = vld [vmem:[%s781_s1 + $0x38] sm:$0xff]   ;;  %534 = vmatpush3.bf16.msra.mxu1 %v589_v11  ;;  %v579_v14 = vld [vmem:[%s781_s1 + $0x40] sm:$0xff]   ;;  %s627_s1 = smov [#allocation2]  }
  0x19   :  { %v580_v15 = vld [vmem:[%s780_s0] ss:$8 sps:$4 sm:$0xff]   ;;  %v583_v16 = vld [vmem:[%s780_s0 + $0x14] ss:$8 sps:$4 sm:$0xff]   ;;  %v585_v17 = vld [vmem:[%s780_s0 + $0x10] ss:$8 sps:$4 sm:$0xff]  }
  0x1a   :  { %149 = vmatpush1.bf16.msra.mxu0 %v577_v12  ;;  %v590_v18 = vld [vmem:[%s783_s3 + $0x20] sm:$0xff]   ;;  %v591_v19 = vld [vmem:[%s783_s3 + $0x28] sm:$0xff]   ;;  %v592_v20 = vld [vmem:[%s783_s3 + $0x30] sm:$0xff]   ;;  %s462_s13 = sshll.u32 %s627_s1, 4  ;;  %s463_s13 = int_to_ptr.vmem [resolvable:$true] %s462_s13 }
  0x1b   :  { %150 = vmatprep.subr.bf16.mxu0 %v626_v1  ;;  %535 = vmatprep.subr.bf16.mxu1 %v590_v18  ;;  %v593_v21 = vld [vmem:[%s783_s3 + $0x38] sm:$0xff]   ;;  %v594_v22 = vld [vmem:[%s785_s5] sm:$0xff]   ;;  %v595_v46 = vld [vmem:[%s785_s5 + $0x8] sm:$0xff]   ;;  %s602_s14 = scalar_lea.vmem %s463_s13, 512  ;;  %p607_p1 = scmp.lt.s32.totalorder %s463_s13, %s463_s13 }
  0x1c   :  { %536 = vmatpush3.bf16.msra.mxu1 %v590_v18  ;;  %v473_v23 = vld [vmem:[%s782_s2] ss:$0 sm:$0xff]  ;;  %v596_v47 = vld [vmem:[%s785_s5 + $0x10] sm:$0xff]   ;;  %v597_v48 = vld [vmem:[%s785_s5 + $0x18] sm:$0xff]   ;;  %p603_p0 = scmp.ne.s32.totalorder %s463_s13, %s602_s14  ;;  %p608_p2 = scmp.lt.s32.totalorder %s602_s14, %s602_s14 }
  0x1d   :  { %537 = vmatprep.subr.bf16.mxu1 %v591_v19  ;;  %v598_v49 = vld [vmem:[%s785_s5 + $0x20] sm:$0xff]   ;;  %v599_v50 = vld [vmem:[%s785_s5 + $0x28] sm:$0xff]   ;;  %v600_v51 = vld [vmem:[%s785_s5 + $0x30] sm:$0xff]  }
  0x1e   :  { %151 = vmatpush1.bf16.msra.mxu0 %v578_v13  ;;  %v601_v52 = vld [vmem:[%s785_s5 + $0x38] sm:$0xff]   ;;  %v489_v53 = vld [vmem:[%s784_s4] ss:$0 sm:$0xff]  ;;  %p609_p3 = por %p608_p2, %p607_p1 }
  0x1f   :  { %152 = vmatprep.subr.bf16.mxu0 %v626_v1  ;;  %v498_v8 = vld [vmem:[%s786_s6] ss:$0 sm:$0xff] }
  0x20   :  { %538 = vmatpush3.bf16.msra.mxu1 %v591_v19  ;;  %p610_p4 = pnand %p609_p3, %p603_p0 }
  0x21   :  { %539 = vmatprep.subr.bf16.mxu1 %v592_v20 }
  0x22   :  { %153 = vmatpush1.bf16.msra.mxu0 %v579_v14 }
  0x24   :  { %540 = vmatpush3.bf16.msra.mxu1 %v592_v20 }
  0x25   :  { %169 = vmatmul.mubr.bf16.vlgmr.msra.gmra.mrb[0].mxu0 %v580_v15  ;;  %541 = vmatprep.subr.bf16.mxu1 %v593_v21 }
  0x26   :  { %488 = vmatprep.mubr.msk.bf16.mxu0 %vm129_vm0, %v583_v16 }
  0x28   :  { %542 = vmatpush3.bf16.msra.mxu1 %v593_v21 }
  0x29   :  { %547 = vmatprep.subr.bf16.mxu1 %v594_v22 }
  0x2d   :  { %177 = vmatmul.mubr.bf16.gmra.mrb[4].mxu0 %v585_v17 }
  0xf8   :  { %v170_v24 = vpop.f32.mrb[0].mxu0 }
  0xf9   :  { %v171_v25 = vadd.f32 %v473_v23, %v170_v24  ;;  %v172_v26 = vpop.f32.mrb[1].mxu0 }
  0xfa   :  { %v173_v27 = vpop.f32.mrb[2].mxu0 }
  0xfb   :  { %v189_v28 = vmul.f32 0.1, %v171_v25  ;;  %v174_v29 = vadd.f32 %v473_v23, %v173_v27  ;;  %v175_v30 = vpop.f32.mrb[3].mxu0  ;;  %vm185_vm1 = vcmp.ge.f32.partialorder %v171_v25, 0.0 }
  0xfd   :  { %v190_v31 = vmul.f32 0.1, %v174_v29  ;;  %vm186_vm2 = vcmp.ge.f32.partialorder %v174_v29, 0.0  ;;  %v193_v32 = vsel %vm185_vm1, %v171_v25, %v189_v28 }
  0xff   :  { %v194_v33 = vsel %vm186_vm2, %v174_v29, %v190_v31 }
 0x100   :  { %v178_v34 = vpop.f32.mrb[4].mxu0  ;;  %v197_v35 = vpack.c.bf16 %v194_v33, %v193_v32 }
 0x101   :  { %v179_v36 = vadd.f32 %v473_v23, %v178_v34  ;;  %v180_v37 = vpop.f32.mrb[5].mxu0 }
 0x102   :  { %v181_v38 = vpop.f32.mrb[6].mxu0  ;;  %543 = vmatprep.mubr.bf16.mxu1 %v197_v35 }
 0x103   :  { %v191_v39 = vmul.f32 0.1, %v179_v36  ;;  %v182_v40 = vadd.f32 %v473_v23, %v181_v38  ;;  %v183_v41 = vpop.f32.mrb[7].mxu0  ;;  %vm187_vm3 = vcmp.ge.f32.partialorder %v179_v36, 0.0 }
 0x105   :  { %vm188_vm4 = vcmp.ge.f32.partialorder %v182_v40, 0.0  ;;  %v192_v42 = vmul.f32 0.1, %v182_v40  ;;  %v195_v43 = vsel %vm187_vm3, %v179_v36, %v191_v39 }
 0x107   :  { %v196_v44 = vsel %vm188_vm4, %v182_v40, %v192_v42 }
 0x108   :  { %v198_v45 = vpack.c.bf16 %v196_v44, %v195_v43 }
 0x10a   :  { %544 = vmatmul.mubr.bf16.vlgmr.msra.gmra.mrb[0].mxu1 %v198_v45 }
 0x10b   :  { %548 = vmatpush3.bf16.msra.mxu1 %v594_v22 }
 0x10c   :  { %549 = vmatprep.subr.bf16.mxu1 %v595_v46 }
 0x10f   :  { %550 = vmatpush3.bf16.msra.mxu1 %v595_v46 }
 0x110   :  { %551 = vmatprep.subr.bf16.mxu1 %v596_v47 }
 0x113   :  { %552 = vmatpush3.bf16.msra.mxu1 %v596_v47 }
 0x114   :  { %553 = vmatprep.subr.bf16.mxu1 %v597_v48 }
 0x117   :  { %554 = vmatpush3.bf16.msra.mxu1 %v597_v48 }
 0x118   :  { %555 = vmatprep.subr.bf16.mxu1 %v598_v49 }
 0x11b   :  { %556 = vmatpush3.bf16.msra.mxu1 %v598_v49 }
 0x11c   :  { %557 = vmatprep.subr.bf16.mxu1 %v599_v50 }
 0x11f   :  { %558 = vmatpush3.bf16.msra.mxu1 %v599_v50 }
 0x120   :  { %559 = vmatprep.subr.bf16.mxu1 %v600_v51 }
 0x123   :  { %560 = vmatpush3.bf16.msra.mxu1 %v600_v51 }
 0x124   :  { %561 = vmatprep.subr.bf16.mxu1 %v601_v52 }
 0x127   :  { %562 = vmatpush3.bf16.msra.mxu1 %v601_v52 }
 0x1dd   :  { %v545_v54 = vpop.f32.mrb[0].mxu1 }
 0x1de   :  { %v313_v55 = vadd.f32 %v545_v54, %v489_v53  ;;  %v304_v56 = vpop.f32.mrb[1].mxu1 }
 0x1df   :  { %v305_v57 = vadd.f32 %v489_v53, %v304_v56  ;;  %v546_v58 = vpop.f32.mrb[2].mxu1 }
 0x1e0   :  { %v325_v59 = vmul.f32 0.1, %v313_v55  ;;  %v316_v60 = vadd.f32 %v546_v58, %v489_v53  ;;  %v307_v61 = vpop.f32.mrb[3].mxu1  ;;  %vm321_vm5 = vcmp.ge.f32.partialorder %v313_v55, 0.0 }
 0x1e1   :  { %v323_v62 = vmul.f32 0.1, %v305_v57  ;;  %v308_v63 = vadd.f32 %v489_v53, %v307_v61  ;;  %vm319_vm6 = vcmp.ge.f32.partialorder %v305_v57, 0.0 }
 0x1e2   :  { %vm322_vm7 = vcmp.ge.f32.partialorder %v316_v60, 0.0  ;;  %v326_v0 = vmul.f32 0.1, %v316_v60  ;;  %v329_v2 = vsel %vm321_vm5, %v313_v55, %v325_v59 }
 0x1e3   :  { %vm320_vm8 = vcmp.ge.f32.partialorder %v308_v63, 0.0  ;;  %v324_v1 = vmul.f32 0.1, %v308_v63  ;;  %v327_v5 = vsel %vm319_vm6, %v305_v57, %v323_v62 }
 0x1e4   :  { %v330_v3 = vsel %vm322_vm7, %v316_v60, %v326_v0 }
 0x1e5   :  { %v332_v4 = vpack.c.bf16 %v330_v3, %v329_v2  ;;  %v328_v6 = vsel %vm320_vm8, %v308_v63, %v324_v1 }
 0x1e6   :  { %v331_v7 = vpack.c.bf16 %v328_v6, %v327_v5 }
 0x1e8   :  { %563 = vmatprep.mubr.bf16.mxu1 %v331_v7 }
 0x1e9   :  { %564 = vmatmul.mubr.bf16.vlgmr.msra.gmra.mrb[4].mxu1 %v332_v4 }
 0x2bc   :  { %v565_v9 = vpop.f32.mrb[4].mxu1 }
 0x2bd   :  { %v447_v10 = vadd.f32 %v565_v9, %v498_v8  ;;  %v438_v11 = vpop.f32.mrb[5].mxu1 }
 0x2be   :  { %v439_v12 = vadd.f32 %v498_v8, %v438_v11  ;;  %v566_v13 = vpop.f32.mrb[6].mxu1 }
 0x2bf   :  { %455 = vst [vmem:[#allocation2 + $0x10] sm:$0xff] %v447_v10  ;;  %v450_v14 = vadd.f32 %v566_v13, %v498_v8  ;;  %v441_v15 = vpop.f32.mrb[7].mxu1 }
 0x2c0   :  { %453 = vst [vmem:[#allocation2] sm:$0xff] %v439_v12  ;;  %v442_v16 = vadd.f32 %v498_v8, %v441_v15 }
 0x2c1   :  { %456 = vst [vmem:[#allocation2 + $0x18] sm:$0xff] %v450_v14 }
 0x2c2   :  { %454 = vst [vmem:[#allocation2 + $0x8] sm:$0xff] %v442_v16 }
 0x2c3   :  { %613 = shalt.err (!%p610_p4)
}
 0x2c4   :  { %s614_s16 = scalar_lea.hbm %s787_s7, 512 }
 0x2c5   :  { %p615_p5 = scmp.ne.s32.totalorder %s787_s7, %s614_s16  ;;  %p618_p6 = scmp.lt.u32.totalorder %s614_s16, %s787_s7 }
 0x2c7   :  { %p620_p7 = pnand %p618_p6, %p615_p5 }
 0x2c9   :  { %623 = shalt.err (!%p620_p7)
}
 0x2ca   :  { %s628_s20 = smov 128   ;;  %s629_s21 = smov 8  }
 0x2cb   :  { %468 = dma.vmem_to_hbm [thread:$0]  %s463_s13, 512, %s787_s7, [#allocation3], %s628_s20, %s628_s20, %s629_s21  }
 0x2cc   :  { %624 = dma.done.wait [#allocation3], 512  }
 0x2cd   :  { %625 = vsyncadd [#allocation3], 4294966784 }
 0x2ce   :  { %472 = vsyncpa [#allocation3], 1 }

// kernel: _forward.2
= control target key start
LH: loop header
LB: loop body
LE: loop exit
PB: predicated region body
PF: predicated region fallthrough
CT: control target
= control target key end

     0   :  { %vm98_vm0 = vcmask 293888   ;;  %vm123_vm1 = vcmask 1041408   ;;  %vm336_vm2 = vcmask 125952   ;;  %s607_s1 = inlined_call_operand.vmem [shape: bf16[36,16], index: 1, kind: input, shape index: {}]   ;;  %s608_s0 = inlined_call_operand.vmem [shape: bf16[128,36], index: 0, kind: input, shape index: {}]   ;;  %s609_s2 = inlined_call_operand.vmem [shape: f32[1,16], index: 2, kind: input, shape index: {}]   ;;  %s610_s3 = inlined_call_operand.vmem [shape: bf16[128,16], index: 3, kind: output, shape index: {}]  }
   0x1   :  { %v450_v0 = vld [vmem:[%s607_s1] sm:$0xff]   ;;  %v451_v1 = vld [vmem:[%s607_s1 + $0x8] sm:$0xff]   ;;  %v452_v2 = vld [vmem:[%s607_s1 + $0x10] ss:$0 sps:$4 sm:$0x33]  }
   0x2   :  { %420 = vmatprep.subr.bf16.mxu0 %v450_v0  ;;  %442 = vmatprep.subr.bf16.mxu1 %v450_v0  ;;  %v453_v3 = vld [vmem:[%s608_s0] sm:$0xff]   ;;  %v125_v5 = vsel %vm123_vm1, %v452_v2, 0  ;;  %v455_v6 = vld [vmem:[%s608_s0 + $0x8] sm:$0xff]   ;;  %v457_v8 = vld [vmem:[%s608_s0 + $0x10] sm:$0xff]  }
   0x3   :  { %421 = vmatpush3.bf16.msra.mxu0 %v450_v0  ;;  %445 = vmatpush3.bf16.msra.mxu1 %v450_v0  ;;  %v454_v4 = vld [vmem:[%s608_s0 + $0x20] sm:$0xff]   ;;  %v456_v7 = vld [vmem:[%s608_s0 + $0x28] sm:$0xff]   ;;  %v458_v9 = vld [vmem:[%s608_s0 + $0x30] sm:$0xff]  }
   0x4   :  { %422 = vmatprep.subr.bf16.mxu0 %v451_v1  ;;  %443 = vmatprep.subr.bf16.mxu1 %v451_v1  ;;  %v459_v10 = vld [vmem:[%s608_s0 + $0x18] sm:$0xff]   ;;  %v525_v12 = vld [vmem:[%s609_s2] ss:$0 sm:$0xff] }
   0x5   :  { %426 = vmatprep.mubr.msk.bf16.mxu0 %vm98_vm0, %v453_v3  ;;  %434 = vmatprep.mubr.msk.bf16.mxu1 %vm98_vm0, %v454_v4  ;;  %v460_v11 = vld [vmem:[%s608_s0 + $0x38] sm:$0xff]  }
   0x7   :  { %423 = vmatpush3.bf16.msra.mxu0 %v451_v1  ;;  %446 = vmatpush3.bf16.msra.mxu1 %v451_v1 }
   0x8   :  { %448 = vmatprep.subr.msk.bf16.mxu0 %vm123_vm1, %v452_v2  ;;  %449 = vmatprep.subr.msk.bf16.mxu1 %vm123_vm1, %v452_v2 }
   0xb   :  { %425 = vmatpush3.bf16.msra.mxu0 %v125_v5  ;;  %447 = vmatpush3.bf16.msra.mxu1 %v125_v5 }
   0xe   :  { %427 = vmatmul.mubr.msk.bf16.vlgmr.msra.gmra.mrb[0].mxu0 %vm98_vm0, %v455_v6  ;;  %435 = vmatmul.mubr.msk.bf16.vlgmr.msra.gmra.mrb[0].mxu1 %vm98_vm0, %v456_v7 }
   0xf   :  { %430 = vmatprep.mubr.msk.bf16.mxu0 %vm98_vm0, %v457_v8  ;;  %438 = vmatprep.mubr.msk.bf16.mxu1 %vm98_vm0, %v458_v9 }
  0x16   :  { %431 = vmatmul.mubr.msk.bf16.gmra.mrb[4].mxu0 %vm98_vm0, %v459_v10  ;;  %439 = vmatmul.mubr.msk.bf16.gmra.mrb[4].mxu1 %vm98_vm0, %v460_v11 }
  0xe1   :  { %v428_v13 = vpop.f32.mrb[0].mxu0  ;;  %v436_v14 = vpop.f32.mrb[0].mxu1 }
  0xe2   :  { %v170_v15 = vadd.f32 %v428_v13, %v525_v12  ;;  %v202_v16 = vadd.f32 %v436_v14, %v525_v12  ;;  %v161_v17 = vpop.f32.mrb[1].mxu0  ;;  %v193_v18 = vpop.f32.mrb[1].mxu1 }
  0xe3   :  { %v162_v19 = vadd.f32 %v525_v12, %v161_v17  ;;  %v194_v20 = vadd.f32 %v525_v12, %v193_v18  ;;  %v429_v21 = vpop.f32.mrb[2].mxu0  ;;  %v437_v22 = vpop.f32.mrb[2].mxu1 }
  0xe4   :  { %vm226_vm3 = vcmp.ge.f32.partialorder %v170_v15, 0.0  ;;  %v242_v23 = vmul.f32 0.1, %v170_v15  ;;  %vm234_vm4 = vcmp.ge.f32.partialorder %v202_v16, 0.0  ;;  %v250_v24 = vmul.f32 0.1, %v202_v16 }
  0xe5   :  { %vm224_vm5 = vcmp.ge.f32.partialorder %v162_v19, 0.0  ;;  %v240_v25 = vmul.f32 0.1, %v162_v19  ;;  %vm232_vm6 = vcmp.ge.f32.partialorder %v194_v20, 0.0  ;;  %v248_v26 = vmul.f32 0.1, %v194_v20 }
  0xe6   :  { %v258_v27 = vsel %vm226_vm3, %v170_v15, %v242_v23  ;;  %v266_v28 = vsel %vm234_vm4, %v202_v16, %v250_v24  ;;  %v173_v29 = vadd.f32 %v429_v21, %v525_v12  ;;  %v205_v30 = vadd.f32 %v437_v22, %v525_v12  ;;  %v164_v31 = vpop.f32.mrb[3].mxu0  ;;  %v196_v32 = vpop.f32.mrb[3].mxu1 }
  0xe7   :  { %v395_v33 = vpack.c.bf16 %v258_v27, %v258_v27  ;;  %v403_v34 = vpack.c.bf16 %v266_v28, %v266_v28  ;;  %v256_v35 = vsel %vm224_vm5, %v162_v19, %v240_v25  ;;  %v264_v36 = vsel %vm232_vm6, %v194_v20, %v248_v26 }
  0xe8   :  { %v393_v37 = vpack.c.bf16 %v256_v35, %v256_v35  ;;  %v401_v38 = vpack.c.bf16 %v264_v36, %v264_v36  ;;  %vm227_vm7 = vcmp.ge.f32.partialorder %v173_v29, 0.0  ;;  %v243_v39 = vmul.f32 0.1, %v173_v29 }
  0xe9   :  { %339 = vst.msk [vmem:[%s610_s3 + $0x8] sm:$0xf] %vm336_vm2, %v395_v33  ;;  %347 = vst.msk [vmem:[%s610_s3 + $0x28] sm:$0xf] %vm336_vm2, %v403_v34  ;;  %vm235_vm8 = vcmp.ge.f32.partialorder %v205_v30, 0.0  ;;  %v165_v41 = vadd.f32 %v525_v12, %v164_v31  ;;  %v197_v42 = vadd.f32 %v525_v12, %v196_v32  ;;  %v432_v43 = vpop.f32.mrb[4].mxu0 }
  0xea   :  { %v251_v40 = vmul.f32 0.1, %v205_v30  ;;  %v440_v44 = vpop.f32.mrb[4].mxu1  ;;  %337 = vst.msk [vmem:[%s610_s3] sm:$0xf] %vm336_vm2, %v393_v37  ;;  %v259_v45 = vsel %vm227_vm7, %v173_v29, %v243_v39  ;;  %v186_v46 = vadd.f32 %v432_v43, %v525_v12  ;;  %v177_v48 = vpop.f32.mrb[5].mxu0 }
  0xeb   :  { %345 = vst.msk [vmem:[%s610_s3 + $0x20] sm:$0xf] %vm336_vm2, %v401_v38  ;;  %v218_v47 = vadd.f32 %v440_v44, %v525_v12  ;;  %v209_v49 = vpop.f32.mrb[5].mxu1  ;;  %v396_v50 = vpack.c.bf16 %v259_v45, %v259_v45  ;;  %vm225_vm9 = vcmp.ge.f32.partialorder %v165_v41, 0.0  ;;  %v241_v52 = vmul.f32 0.1, %v165_v41 }
  0xec   :  { %v267_v51 = vsel %vm235_vm8, %v205_v30, %v251_v40  ;;  %v433_v53 = vpop.f32.mrb[6].mxu0  ;;  %v441_v54 = vpop.f32.mrb[6].mxu1  ;;  %vm233_vm10 = vcmp.ge.f32.partialorder %v197_v42, 0.0  ;;  %v249_v56 = vmul.f32 0.1, %v197_v42  ;;  %vm230_vm11 = vcmp.ge.f32.partialorder %v186_v46, 0.0 }
  0xed   :  { %v404_v55 = vpack.c.bf16 %v267_v51, %v267_v51  ;;  %v180_v57 = vpop.f32.mrb[7].mxu0  ;;  %v212_v58 = vpop.f32.mrb[7].mxu1  ;;  %340 = vst.msk [vmem:[%s610_s3 + $0xc] sm:$0xf] %vm336_vm2, %v396_v50  ;;  %v257_v59 = vsel %vm225_vm9, %v165_v41, %v241_v52  ;;  %v246_v60 = vmul.f32 0.1, %v186_v46  ;;  %v178_v0 = vadd.f32 %v525_v12, %v177_v48 }
  0xee   :  { %vm238_vm12 = vcmp.ge.f32.partialorder %v218_v47, 0.0  ;;  %v254_v61 = vmul.f32 0.1, %v218_v47  ;;  %v394_v62 = vpack.c.bf16 %v257_v59, %v257_v59  ;;  %v265_v63 = vsel %vm233_vm10, %v197_v42, %v249_v56 }
  0xef   :  { %348 = vst.msk [vmem:[%s610_s3 + $0x2c] sm:$0xf] %vm336_vm2, %v404_v55  ;;  %v210_v1 = vadd.f32 %v525_v12, %v209_v49  ;;  %v402_v2 = vpack.c.bf16 %v265_v63, %v265_v63  ;;  %v262_v3 = vsel %vm230_vm11, %v186_v46, %v246_v60  ;;  %v189_v5 = vadd.f32 %v433_v53, %v525_v12 }
  0xf0   :  { %v270_v4 = vsel %vm238_vm12, %v218_v47, %v254_v61  ;;  %338 = vst.msk [vmem:[%s610_s3 + $0x4] sm:$0xf] %vm336_vm2, %v394_v62  ;;  %v399_v6 = vpack.c.bf16 %v262_v3, %v262_v3  ;;  %vm228_vm13 = vcmp.ge.f32.partialorder %v178_v0, 0.0  ;;  %v244_v8 = vmul.f32 0.1, %v178_v0 }
  0xf1   :  { %v407_v7 = vpack.c.bf16 %v270_v4, %v270_v4  ;;  %346 = vst.msk [vmem:[%s610_s3 + $0x24] sm:$0xf] %vm336_vm2, %v402_v2  ;;  %vm236_vm14 = vcmp.ge.f32.partialorder %v210_v1, 0.0  ;;  %v252_v9 = vmul.f32 0.1, %v210_v1  ;;  %vm231_vm15 = vcmp.ge.f32.partialorder %v189_v5, 0.0 }
  0xf2   :  { %v247_v10 = vmul.f32 0.1, %v189_v5  ;;  %343 = vst.msk [vmem:[%s610_s3 + $0x18] sm:$0xf] %vm336_vm2, %v399_v6  ;;  %v260_v11 = vsel %vm228_vm13, %v178_v0, %v244_v8  ;;  %v221_v13 = vadd.f32 %v441_v54, %v525_v12  ;;  %v181_v14 = vadd.f32 %v525_v12, %v180_v57 }
  0xf3   :  { %351 = vst.msk [vmem:[%s610_s3 + $0x38] sm:$0xf] %vm336_vm2, %v407_v7  ;;  %v213_v15 = vadd.f32 %v525_v12, %v212_v58  ;;  %v397_v16 = vpack.c.bf16 %v260_v11, %v260_v11  ;;  %v268_v17 = vsel %vm236_vm14, %v210_v1, %v252_v9 }
  0xf4   :  { %v263_v18 = vsel %vm231_vm15, %v189_v5, %v247_v10  ;;  %v405_v19 = vpack.c.bf16 %v268_v17, %v268_v17  ;;  %vm239_vm0 = vcmp.ge.f32.partialorder %v221_v13, 0.0  ;;  %v255_v21 = vmul.f32 0.1, %v221_v13 }
  0xf5   :  { %v400_v20 = vpack.c.bf16 %v263_v18, %v263_v18  ;;  %341 = vst.msk [vmem:[%s610_s3 + $0x10] sm:$0xf] %vm336_vm2, %v397_v16  ;;  %vm229_vm1 = vcmp.ge.f32.partialorder %v181_v14, 0.0  ;;  %v245_v22 = vmul.f32 0.1, %v181_v14  ;;  %vm237_vm3 = vcmp.ge.f32.partialorder %v213_v15, 0.0 }
  0xf6   :  { %v253_v23 = vmul.f32 0.1, %v213_v15  ;;  %349 = vst.msk [vmem:[%s610_s3 + $0x30] sm:$0xf] %vm336_vm2, %v405_v19  ;;  %v271_v12 = vsel %vm239_vm0, %v221_v13, %v255_v21 }
  0xf7   :  { %344 = vst.msk [vmem:[%s610_s3 + $0x1c] sm:$0xf] %vm336_vm2, %v400_v20  ;;  %v408_v24 = vpack.c.bf16 %v271_v12, %v271_v12  ;;  %v261_v25 = vsel %vm229_vm1, %v181_v14, %v245_v22 }
  0xf8   :  { %v269_v26 = vsel %vm237_vm3, %v213_v15, %v253_v23  ;;  %v398_v27 = vpack.c.bf16 %v261_v25, %v261_v25 }
  0xf9   :  { %v406_v28 = vpack.c.bf16 %v269_v26, %v269_v26  ;;  %352 = vst.msk [vmem:[%s610_s3 + $0x3c] sm:$0xf] %vm336_vm2, %v408_v24 }
  0xfa   :  { %342 = vst.msk [vmem:[%s610_s3 + $0x14] sm:$0xf] %vm336_vm2, %v398_v27 }
  0xfb   :  { %350 = vst.msk [vmem:[%s610_s3 + $0x34] sm:$0xf] %vm336_vm2, %v406_v28 }

</bundles_post_ra>
